<compile_context>
chip_gen: v7x
topology: tpu7x:2x2x1
jax: 0.10.0
libtpu: 0.0.40
codegen_flags: <defaults>
</compile_context>

<pallas_src>
import jax
import jax.numpy as jnp
from jax.experimental import pallas as pl
from jax.experimental.pallas import tpu as pltpu


# ----------------------------- fused model kernel -----------------------------
def fused_model_kernel(x_ref, w_hoist_ref, w_round_ref, w_mlp_ref, biases_ref,
                       emb_ref, out_ref):
    """2-layer GRU (wavefront-interleaved) + MLP head, fully VMEM resident.

    Packed layouts (H = hidden size, PyTorch gate order r|z|n):
      x_ref    (S*B, Din)  time-major flattened input sequence
      w_hoist  (Din, 6H)   cols: [Wih0_r | 0 | Wih0_z | 0 | Wih0_n | 0]
      w_round  (2H,  8H)   rows 0:H multiply h0, rows H:2H multiply h1; cols:
                           [gh0_r | g1_r | gh0_z | g1_z | gh0_n | gh1_n | 0 | gi1_n]
      w_mlp    (2H+E+L, L) rows: [zeros(H); W1_state^T ; W1_emb^T ; W2^T col-padded]
      biases   (4, 6H)     row0: hoisted gate biases (matches w_hoist columns)
                           row1[:2H] = [b_hh0_n | b_hh1_n], row2[:L] = b1, row3[:O] = b2
      emb_ref  (B, E)      concat(loc_x, loc_y, time) embeddings
      out_ref  (B, O)
    """
    f32 = jnp.float32
    B = emb_ref.shape[0]
    S = x_ref.shape[0] // B
    H2 = w_round_ref.shape[0]          # 2H
    H = H2 // 2
    E = emb_ref.shape[1]
    L = w_mlp_ref.shape[1]
    O = out_ref.shape[1]

    bias_all = biases_ref[...]

    # Hoisted layer-0 input projection with every foldable bias folded in:
    #   gi_full[:, 0:4H]  = [gi0_r + b_r0 | b_r1 | gi0_z + b_z0 | b_z1]
    #   gi_full[:, 4H:6H] = [gi0_n + b_ih0_n | b_ih1_n]
    gi_full = (jnp.dot(x_ref[...], w_hoist_ref[...], preferred_element_type=f32)
               + bias_all[0:1, :])

    # The only per-step bias that cannot be folded (it is multiplied by r); broadcast once.
    bhhn = jnp.broadcast_to(bias_all[1:2, :H2], (B, H2))     # [b_hh0_n | b_hh1_n]

    w_round = w_round_ref[...]

    # ---- round 0: h0 = h1 = 0, so the h-dependent matmul is identically zero ----
    gi = gi_full[0:B, :]
    rz = jax.nn.sigmoid(gi[:, :2 * H2])                 # [r0 | r1* | z0 | z1*]  (* = dead)
    r_pair = rz[:, :H2]
    z_pair = rz[:, H2:]
    n_pair = jnp.tanh(gi[:, 2 * H2:] + r_pair * bhhn)
    hcat = n_pair - z_pair * n_pair                     # (1-z)*n   with h = 0
    lane = jax.lax.broadcasted_iota(jnp.int32, (B, H2), 1)
    hcat = jnp.where(lane < H, hcat, 0.0)               # layer-1 initial state is 0

    # ---- wavefront rounds 1..S: layer-0 step t and layer-1 step t-1, ONE matmul ----
    for rnd in range(1, S + 1):
        t = min(rnd, S - 1)    # at rnd == S the layer-0 half is dead (zero rows in w_mlp)
        gi = gi_full[t * B:(t + 1) * B, :]
        g = jnp.dot(hcat, w_round, preferred_element_type=f32)       # (B, 8H)
        rz = jax.nn.sigmoid(g[:, :2 * H2] + gi[:, :2 * H2])          # [r0 | r1 | z0 | z1]
        r_pair = rz[:, :H2]
        z_pair = rz[:, H2:]
        n_pair = jnp.tanh(gi[:, 2 * H2:] + g[:, 3 * H2:]
                          + r_pair * (g[:, 2 * H2:3 * H2] + bhhn))
        hcat = n_pair + z_pair * (hcat - n_pair)

    # ---- MLP head on concat([state, emb]); split W1 keeps dots adjacent and the
    #      zero rows of w_mlp kill the dead h0 lanes of hcat ----
    w_mlp = w_mlp_ref[...]
    h = (jnp.dot(hcat, w_mlp[:H2, :], preferred_element_type=f32)
         + jnp.dot(emb_ref[...], w_mlp[H2:H2 + E, :], preferred_element_type=f32)
         + bias_all[2:3, :L])
    h = jnp.maximum(h, 0.0)
    out = jnp.dot(h, w_mlp[H2 + E:, :], preferred_element_type=f32)   # (B, L), cols :O valid
    out_ref[...] = out[:, :O] + bias_all[3:4, :O]


# --------------------------- one-time weight packing ---------------------------
def prepare_params(params):
    """Host-side, one-time packing of all weights into MXU/VMEM-friendly arrays."""
    f32 = jnp.float32
    gru = params["gru"]
    assert len(gru) == 2, "fused wavefront kernel is specialized to num_layers == 2"
    # TODO(synk): generalize the wavefront packing to num_layers != 2.
    w_ih0, w_hh0, b_ih0, b_hh0 = [a.astype(f32) for a in gru[0]]
    w_ih1, w_hh1, b_ih1, b_hh1 = [a.astype(f32) for a in gru[1]]
    H = w_hh0.shape[1]
    Din = w_ih0.shape[1]
    w1 = params["w1"].astype(f32)          # (L, H + E)
    b1 = params["b1"].astype(f32)          # (1, L)
    w2 = params["w2"].astype(f32)          # (O, L)
    b2 = params["b2"].astype(f32)          # (1, O)
    O, L = w2.shape

    def wg(w, g):                          # gate rows: r=0, z=1, n=2
        return w[g * H:(g + 1) * H, :]

    def bg(b, g):
        return b[:, g * H:(g + 1) * H]

    zH = jnp.zeros((H, H), f32)
    zD = jnp.zeros((Din, H), f32)

    # Hoisted layer-0 input-projection weight (Din, 6H).
    w_hoist = jnp.concatenate(
        [wg(w_ih0, 0).T, zD, wg(w_ih0, 1).T, zD, wg(w_ih0, 2).T, zD], axis=1)

    # Per-round fused recurrent weight (2H, 8H): rows 0:H <- h0, rows H:2H <- h1.
    def col(top, bot):
        return jnp.concatenate([top, bot], axis=0)

    w_round = jnp.concatenate([
        col(wg(w_hh0, 0).T, zH),                    # gh0_r
        col(wg(w_ih1, 0).T, wg(w_hh1, 0).T),        # g1_r
        col(wg(w_hh0, 1).T, zH),                    # gh0_z
        col(wg(w_ih1, 1).T, wg(w_hh1, 1).T),        # g1_z
        col(wg(w_hh0, 2).T, zH),                    # gh0_n (multiplied by r0)
        col(zH, wg(w_hh1, 2).T),                    # gh1_n (multiplied by r1)
        col(zH, zH),                                # layer-0 slot of the non-r n block
        col(wg(w_ih1, 2).T, zH),                    # gi1_n (outside r1)
    ], axis=1)

    # Hoisted biases (1, 6H): r/z fully folded, n only the input-side part.
    b_hoist = jnp.concatenate([
        bg(b_ih0, 0) + bg(b_hh0, 0), bg(b_ih1, 0) + bg(b_hh1, 0),
        bg(b_ih0, 1) + bg(b_hh0, 1), bg(b_ih1, 1) + bg(b_hh1, 1),
        bg(b_ih0, 2),                bg(b_ih1, 2)], axis=1)
    b_hhn = jnp.concatenate([bg(b_hh0, 2), bg(b_hh1, 2)], axis=1)   # (1, 2H)

    W = b_hoist.shape[1]

    def padrow(v):
        return jnp.pad(v, ((0, 0), (0, W - v.shape[1])))

    biases = jnp.concatenate([b_hoist, padrow(b_hhn), padrow(b1), padrow(b2)], axis=0)

    # MLP weights (2H + E + L, L): zero rows kill the dead h0 lanes of hcat.
    w_mlp = jnp.concatenate([
        jnp.zeros((H, L), f32),
        w1[:, :H].T,                                 # state half of W1
        w1[:, H:].T,                                 # embedding half of W1
        jnp.pad(w2.T, ((0, 0), (0, L - O))),         # W2, column-padded to L
    ], axis=0)

    return {
        "w_hoist": w_hoist, "w_round": w_round, "w_mlp": w_mlp, "biases": biases,
        "emb_loc_x": params["emb_loc_x"].astype(f32),
        "emb_loc_y": params["emb_loc_y"].astype(f32),
        "emb_time": params["emb_time"].astype(f32),
        "out_dim": int(O),
    }


def make_model(params):
    """Returns a jitted forward(X, locations, times); all weight prep done once here."""
    prepped = prepare_params(params)
    O = prepped["out_dim"]
    w_hoist, w_round = prepped["w_hoist"], prepped["w_round"]
    w_mlp, biases = prepped["w_mlp"], prepped["biases"]
    emb_x, emb_y, emb_t = prepped["emb_loc_x"], prepped["emb_loc_y"], prepped["emb_time"]

    vmem = pl.BlockSpec(memory_space=pltpu.MemorySpace.VMEM)

    @jax.jit
    def forward(X, locations, times):
        B, S, Din = X.shape
        # X.permute(1, 0, 2).float() -> time-major, flattened for the hoisted projection.
        x_flat = jnp.transpose(X, (1, 0, 2)).astype(jnp.float32).reshape(S * B, Din)
        # Embedding lookups (gather glue) stay as plain JAX outside the kernel.
        emb = jnp.concatenate([
            jnp.take(emb_x, locations[:, 0], axis=0),
            jnp.take(emb_y, locations[:, 1], axis=0),
            jnp.take(emb_t, times, axis=0)], axis=1).astype(jnp.float32)

        # TODO(synk): on v7x, add a batch-parallel grid axis once batch >= 16 so the
        # second TensorCore is engaged; at batch=8 a single core is the right call.
        return pl.pallas_call(
            fused_model_kernel,
            out_shape=jax.ShapeDtypeStruct((B, O), jnp.float32),
            in_specs=[vmem] * 6,
            out_specs=vmem,
        )(x_flat, w_hoist, w_round, w_mlp, biases, emb)

    return forward


# -------------------------- pure-JAX reference check -------------------------
def gru_layer_ref(x_seq, w_ih, w_hh, b_ih, b_hh):
    H = w_hh.shape[1]
    B = x_seq.shape[1]

    def step(h, x):
        gi = x @ w_ih.T + b_ih
        gh = h @ w_hh.T + b_hh
        r = jax.nn.sigmoid(gi[:, :H] + gh[:, :H])
        z = jax.nn.sigmoid(gi[:, H:2 * H] + gh[:, H:2 * H])
        n = jnp.tanh(gi[:, 2 * H:] + r * gh[:, 2 * H:])
        h_new = (1.0 - z) * n + z * h
        return h_new, h_new

    _, hs = jax.lax.scan(step, jnp.zeros((B, H), jnp.float32), x_seq)
    return hs


def model_forward_ref(params, X, locations, times):
    x_seq = jnp.transpose(X, (1, 0, 2)).astype(jnp.float32)
    h = x_seq
    for (w_ih, w_hh, b_ih, b_hh) in params["gru"]:
        h = gru_layer_ref(h, w_ih, w_hh, b_ih, b_hh)
    state_last = h[-1]
    loc_x = jnp.take(params["emb_loc_x"], locations[:, 0], axis=0)
    loc_y = jnp.take(params["emb_loc_y"], locations[:, 1], axis=0)
    t_emb = jnp.take(params["emb_time"], times, axis=0)
    feat = jnp.concatenate([state_last, loc_x, loc_y, t_emb], axis=1)
    h1 = jnp.maximum(feat @ params["w1"].T + params["b1"], 0.0)
    return h1 @ params["w2"].T + params["b2"]


# ------------------------------------ main ------------------------------------
if __name__ == "__main__":
    # Config (small, consistent with my_confg fields)
    loc_dim, embed_loc_size = 10, 8
    time_dim, embed_time_size = 24, 8
    X_dim, num_hiddens, num_layers = 16, 32, 2
    l_dim, output_dim = 32, 4
    batch, seq = 8, 8
    concat_dim = num_hiddens + 2 * embed_loc_size + embed_time_size

    key = jax.random.PRNGKey(0)
    keys = jax.random.split(key, 16)

    def init(k, shape, scale=0.1):
        return (scale * jax.random.normal(k, shape)).astype(jnp.float32)

    gru_params = []
    for layer in range(num_layers):
        d_in = X_dim if layer == 0 else num_hiddens
        kk = jax.random.split(keys[layer], 4)
        gru_params.append((
            init(kk[0], (3 * num_hiddens, d_in)),
            init(kk[1], (3 * num_hiddens, num_hiddens)),
            init(kk[2], (1, 3 * num_hiddens)),
            init(kk[3], (1, 3 * num_hiddens)),
        ))

    params = {
        "gru": gru_params,
        "emb_loc_x": init(keys[4], (loc_dim, embed_loc_size), 1.0),
        "emb_loc_y": init(keys[5], (loc_dim, embed_loc_size), 1.0),
        "emb_time": init(keys[6], (time_dim, embed_time_size), 1.0),
        "w1": init(keys[7], (l_dim, concat_dim)),
        "b1": init(keys[8], (1, l_dim)),
        "w2": init(keys[9], (output_dim, l_dim)),
        "b2": init(keys[10], (1, output_dim)),
    }

    X = jax.random.normal(keys[11], (batch, seq, X_dim), dtype=jnp.float32)
    locations = jax.random.randint(keys[12], (batch, 2), 0, loc_dim, dtype=jnp.int32)
    times = jax.random.randint(keys[13], (batch,), 0, time_dim, dtype=jnp.int32)

    forward = make_model(params)
    out = jax.block_until_ready(forward(X, locations, times))
    ref = jax.block_until_ready(model_forward_ref(params, X, locations, times))

    assert out.shape == (batch, output_dim)
    assert jnp.allclose(out, ref, rtol=1e-4, atol=1e-4)
    print("KERNEL_OK")
</pallas_src>

<mosaic_0001>
module attributes {stable_mosaic.version = 11 : i64} {
  func.func @fused_model_kernel(%arg0: memref<64x16xf32, #tpu.memory_space<vmem>>, %arg1: memref<16x192xf32, #tpu.memory_space<vmem>>, %arg2: memref<64x256xf32, #tpu.memory_space<vmem>>, %arg3: memref<120x32xf32, #tpu.memory_space<vmem>>, %arg4: memref<4x192xf32, #tpu.memory_space<vmem>>, %arg5: memref<8x24xf32, #tpu.memory_space<vmem>>, %arg6: memref<8x4xf32, #tpu.memory_space<vmem>>) attributes {dimension_semantics = [], scalar_prefetch = 0 : i64, scratch_operands = 0 : i64, tpu.core_type = #tpu.core_type<tc>} {
    %c0 = arith.constant 0 : index
    %c0_0 = arith.constant 0 : index
    %0 = vector.load %arg4[%c0, %c0_0] : memref<4x192xf32, #tpu.memory_space<vmem>>, vector<4x192xf32>
    %c0_1 = arith.constant 0 : index
    %c0_2 = arith.constant 0 : index
    %1 = vector.load %arg0[%c0_1, %c0_2] : memref<64x16xf32, #tpu.memory_space<vmem>>, vector<64x16xf32>
    %c0_3 = arith.constant 0 : index
    %c0_4 = arith.constant 0 : index
    %2 = vector.load %arg1[%c0_3, %c0_4] : memref<16x192xf32, #tpu.memory_space<vmem>>, vector<16x192xf32>
    %cst = arith.constant dense<0.000000e+00> : vector<64x192xf32>
    %3 = tpu.matmul %1, %2, %cst {dimension_numbers = #tpu.dot_dimension_numbers<[1], [0], [0], [1], [0, 0, 1, 1], [], []>} : vector<64x16xf32>, vector<16x192xf32>, vector<64x192xf32> -> vector<64x192xf32>
    %4 = vector.extract_strided_slice %0 {offsets = [0, 0], sizes = [1, 192], strides = [1, 1]} : vector<4x192xf32> to vector<1x192xf32>
    %5 = vector.broadcast %4 : vector<1x192xf32> to vector<64x192xf32>
    %6 = arith.addf %3, %5 : vector<64x192xf32>
    %7 = vector.extract_strided_slice %0 {offsets = [1, 0], sizes = [1, 64], strides = [1, 1]} : vector<4x192xf32> to vector<1x64xf32>
    %8 = vector.shape_cast %7 : vector<1x64xf32> to vector<1x64xf32>
    %9 = vector.broadcast %8 : vector<1x64xf32> to vector<8x64xf32>
    %c0_5 = arith.constant 0 : index
    %c0_6 = arith.constant 0 : index
    %10 = vector.load %arg2[%c0_5, %c0_6] : memref<64x256xf32, #tpu.memory_space<vmem>>, vector<64x256xf32>
    %11 = vector.extract_strided_slice %6 {offsets = [0, 0], sizes = [8, 192], strides = [1, 1]} : vector<64x192xf32> to vector<8x192xf32>
    %12 = vector.extract_strided_slice %11 {offsets = [0, 0], sizes = [8, 128], strides = [1, 1]} : vector<8x192xf32> to vector<8x128xf32>
    %13 = arith.negf %12 : vector<8x128xf32>
    %14 = math.exp %13 : vector<8x128xf32>
    %cst_7 = arith.constant 1.000000e+00 : f32
    %15 = vector.broadcast %cst_7 : f32 to vector<8x128xf32>
    %16 = arith.addf %15, %14 : vector<8x128xf32>
    %17 = arith.divf %15, %16 : vector<8x128xf32>
    %18 = vector.extract_strided_slice %17 {offsets = [0, 0], sizes = [8, 64], strides = [1, 1]} : vector<8x128xf32> to vector<8x64xf32>
    %19 = vector.extract_strided_slice %17 {offsets = [0, 64], sizes = [8, 64], strides = [1, 1]} : vector<8x128xf32> to vector<8x64xf32>
    %20 = vector.extract_strided_slice %11 {offsets = [0, 128], sizes = [8, 64], strides = [1, 1]} : vector<8x192xf32> to vector<8x64xf32>
    %21 = arith.mulf %18, %9 : vector<8x64xf32>
    %22 = arith.addf %20, %21 : vector<8x64xf32>
    %23 = math.tanh %22 : vector<8x64xf32>
    %24 = arith.mulf %19, %23 : vector<8x64xf32>
    %25 = arith.subf %23, %24 : vector<8x64xf32>
    %26 = tpu.iota {dimensions = array<i32: 1>} : vector<8x64xi32>
    %c32_i32 = arith.constant 32 : i32
    %27 = vector.broadcast %c32_i32 : i32 to vector<8x64xi32>
    %28 = arith.cmpi slt, %26, %27 : vector<8x64xi32>
    %cst_8 = arith.constant 0.000000e+00 : f32
    %29 = vector.broadcast %cst_8 : f32 to vector<8x64xf32>
    %30 = arith.select %28, %25, %29 : vector<8x64xi1>, vector<8x64xf32>
    %31 = vector.extract_strided_slice %6 {offsets = [8, 0], sizes = [8, 192], strides = [1, 1]} : vector<64x192xf32> to vector<8x192xf32>
    %cst_9 = arith.constant dense<0.000000e+00> : vector<8x256xf32>
    %32 = tpu.matmul %30, %10, %cst_9 {dimension_numbers = #tpu.dot_dimension_numbers<[1], [0], [0], [1], [0, 0, 1, 1], [], []>} : vector<8x64xf32>, vector<64x256xf32>, vector<8x256xf32> -> vector<8x256xf32>
    %33 = vector.extract_strided_slice %32 {offsets = [0, 0], sizes = [8, 128], strides = [1, 1]} : vector<8x256xf32> to vector<8x128xf32>
    %34 = vector.extract_strided_slice %31 {offsets = [0, 0], sizes = [8, 128], strides = [1, 1]} : vector<8x192xf32> to vector<8x128xf32>
    %35 = arith.addf %33, %34 : vector<8x128xf32>
    %36 = arith.negf %35 : vector<8x128xf32>
    %37 = math.exp %36 : vector<8x128xf32>
    %cst_10 = arith.constant 1.000000e+00 : f32
    %38 = vector.broadcast %cst_10 : f32 to vector<8x128xf32>
    %39 = arith.addf %38, %37 : vector<8x128xf32>
    %40 = arith.divf %38, %39 : vector<8x128xf32>
    %41 = vector.extract_strided_slice %40 {offsets = [0, 0], sizes = [8, 64], strides = [1, 1]} : vector<8x128xf32> to vector<8x64xf32>
    %42 = vector.extract_strided_slice %40 {offsets = [0, 64], sizes = [8, 64], strides = [1, 1]} : vector<8x128xf32> to vector<8x64xf32>
    %43 = vector.extract_strided_slice %31 {offsets = [0, 128], sizes = [8, 64], strides = [1, 1]} : vector<8x192xf32> to vector<8x64xf32>
    %44 = vector.extract_strided_slice %32 {offsets = [0, 192], sizes = [8, 64], strides = [1, 1]} : vector<8x256xf32> to vector<8x64xf32>
    %45 = arith.addf %43, %44 : vector<8x64xf32>
    %46 = vector.extract_strided_slice %32 {offsets = [0, 128], sizes = [8, 64], strides = [1, 1]} : vector<8x256xf32> to vector<8x64xf32>
    %47 = arith.addf %46, %9 : vector<8x64xf32>
    %48 = arith.mulf %41, %47 : vector<8x64xf32>
    %49 = arith.addf %45, %48 : vector<8x64xf32>
    %50 = math.tanh %49 : vector<8x64xf32>
    %51 = arith.subf %30, %50 : vector<8x64xf32>
    %52 = arith.mulf %42, %51 : vector<8x64xf32>
    %53 = arith.addf %50, %52 : vector<8x64xf32>
    %54 = vector.extract_strided_slice %6 {offsets = [16, 0], sizes = [8, 192], strides = [1, 1]} : vector<64x192xf32> to vector<8x192xf32>
    %cst_11 = arith.constant dense<0.000000e+00> : vector<8x256xf32>
    %55 = tpu.matmul %53, %10, %cst_11 {dimension_numbers = #tpu.dot_dimension_numbers<[1], [0], [0], [1], [0, 0, 1, 1], [], []>} : vector<8x64xf32>, vector<64x256xf32>, vector<8x256xf32> -> vector<8x256xf32>
    %56 = vector.extract_strided_slice %55 {offsets = [0, 0], sizes = [8, 128], strides = [1, 1]} : vector<8x256xf32> to vector<8x128xf32>
    %57 = vector.extract_strided_slice %54 {offsets = [0, 0], sizes = [8, 128], strides = [1, 1]} : vector<8x192xf32> to vector<8x128xf32>
    %58 = arith.addf %56, %57 : vector<8x128xf32>
    %59 = arith.negf %58 : vector<8x128xf32>
    %60 = math.exp %59 : vector<8x128xf32>
    %cst_12 = arith.constant 1.000000e+00 : f32
    %61 = vector.broadcast %cst_12 : f32 to vector<8x128xf32>
    %62 = arith.addf %61, %60 : vector<8x128xf32>
    %63 = arith.divf %61, %62 : vector<8x128xf32>
    %64 = vector.extract_strided_slice %63 {offsets = [0, 0], sizes = [8, 64], strides = [1, 1]} : vector<8x128xf32> to vector<8x64xf32>
    %65 = vector.extract_strided_slice %63 {offsets = [0, 64], sizes = [8, 64], strides = [1, 1]} : vector<8x128xf32> to vector<8x64xf32>
    %66 = vector.extract_strided_slice %54 {offsets = [0, 128], sizes = [8, 64], strides = [1, 1]} : vector<8x192xf32> to vector<8x64xf32>
    %67 = vector.extract_strided_slice %55 {offsets = [0, 192], sizes = [8, 64], strides = [1, 1]} : vector<8x256xf32> to vector<8x64xf32>
    %68 = arith.addf %66, %67 : vector<8x64xf32>
    %69 = vector.extract_strided_slice %55 {offsets = [0, 128], sizes = [8, 64], strides = [1, 1]} : vector<8x256xf32> to vector<8x64xf32>
    %70 = arith.addf %69, %9 : vector<8x64xf32>
    %71 = arith.mulf %64, %70 : vector<8x64xf32>
    %72 = arith.addf %68, %71 : vector<8x64xf32>
    %73 = math.tanh %72 : vector<8x64xf32>
    %74 = arith.subf %53, %73 : vector<8x64xf32>
    %75 = arith.mulf %65, %74 : vector<8x64xf32>
    %76 = arith.addf %73, %75 : vector<8x64xf32>
    %77 = vector.extract_strided_slice %6 {offsets = [24, 0], sizes = [8, 192], strides = [1, 1]} : vector<64x192xf32> to vector<8x192xf32>
    %cst_13 = arith.constant dense<0.000000e+00> : vector<8x256xf32>
    %78 = tpu.matmul %76, %10, %cst_13 {dimension_numbers = #tpu.dot_dimension_numbers<[1], [0], [0], [1], [0, 0, 1, 1], [], []>} : vector<8x64xf32>, vector<64x256xf32>, vector<8x256xf32> -> vector<8x256xf32>
    %79 = vector.extract_strided_slice %78 {offsets = [0, 0], sizes = [8, 128], strides = [1, 1]} : vector<8x256xf32> to vector<8x128xf32>
    %80 = vector.extract_strided_slice %77 {offsets = [0, 0], sizes = [8, 128], strides = [1, 1]} : vector<8x192xf32> to vector<8x128xf32>
    %81 = arith.addf %79, %80 : vector<8x128xf32>
    %82 = arith.negf %81 : vector<8x128xf32>
    %83 = math.exp %82 : vector<8x128xf32>
    %cst_14 = arith.constant 1.000000e+00 : f32
    %84 = vector.broadcast %cst_14 : f32 to vector<8x128xf32>
    %85 = arith.addf %84, %83 : vector<8x128xf32>
    %86 = arith.divf %84, %85 : vector<8x128xf32>
    %87 = vector.extract_strided_slice %86 {offsets = [0, 0], sizes = [8, 64], strides = [1, 1]} : vector<8x128xf32> to vector<8x64xf32>
    %88 = vector.extract_strided_slice %86 {offsets = [0, 64], sizes = [8, 64], strides = [1, 1]} : vector<8x128xf32> to vector<8x64xf32>
    %89 = vector.extract_strided_slice %77 {offsets = [0, 128], sizes = [8, 64], strides = [1, 1]} : vector<8x192xf32> to vector<8x64xf32>
    %90 = vector.extract_strided_slice %78 {offsets = [0, 192], sizes = [8, 64], strides = [1, 1]} : vector<8x256xf32> to vector<8x64xf32>
    %91 = arith.addf %89, %90 : vector<8x64xf32>
    %92 = vector.extract_strided_slice %78 {offsets = [0, 128], sizes = [8, 64], strides = [1, 1]} : vector<8x256xf32> to vector<8x64xf32>
    %93 = arith.addf %92, %9 : vector<8x64xf32>
    %94 = arith.mulf %87, %93 : vector<8x64xf32>
    %95 = arith.addf %91, %94 : vector<8x64xf32>
    %96 = math.tanh %95 : vector<8x64xf32>
    %97 = arith.subf %76, %96 : vector<8x64xf32>
    %98 = arith.mulf %88, %97 : vector<8x64xf32>
    %99 = arith.addf %96, %98 : vector<8x64xf32>
    %100 = vector.extract_strided_slice %6 {offsets = [32, 0], sizes = [8, 192], strides = [1, 1]} : vector<64x192xf32> to vector<8x192xf32>
    %cst_15 = arith.constant dense<0.000000e+00> : vector<8x256xf32>
    %101 = tpu.matmul %99, %10, %cst_15 {dimension_numbers = #tpu.dot_dimension_numbers<[1], [0], [0], [1], [0, 0, 1, 1], [], []>} : vector<8x64xf32>, vector<64x256xf32>, vector<8x256xf32> -> vector<8x256xf32>
    %102 = vector.extract_strided_slice %101 {offsets = [0, 0], sizes = [8, 128], strides = [1, 1]} : vector<8x256xf32> to vector<8x128xf32>
    %103 = vector.extract_strided_slice %100 {offsets = [0, 0], sizes = [8, 128], strides = [1, 1]} : vector<8x192xf32> to vector<8x128xf32>
    %104 = arith.addf %102, %103 : vector<8x128xf32>
    %105 = arith.negf %104 : vector<8x128xf32>
    %106 = math.exp %105 : vector<8x128xf32>
    %cst_16 = arith.constant 1.000000e+00 : f32
    %107 = vector.broadcast %cst_16 : f32 to vector<8x128xf32>
    %108 = arith.addf %107, %106 : vector<8x128xf32>
    %109 = arith.divf %107, %108 : vector<8x128xf32>
    %110 = vector.extract_strided_slice %109 {offsets = [0, 0], sizes = [8, 64], strides = [1, 1]} : vector<8x128xf32> to vector<8x64xf32>
    %111 = vector.extract_strided_slice %109 {offsets = [0, 64], sizes = [8, 64], strides = [1, 1]} : vector<8x128xf32> to vector<8x64xf32>
    %112 = vector.extract_strided_slice %100 {offsets = [0, 128], sizes = [8, 64], strides = [1, 1]} : vector<8x192xf32> to vector<8x64xf32>
    %113 = vector.extract_strided_slice %101 {offsets = [0, 192], sizes = [8, 64], strides = [1, 1]} : vector<8x256xf32> to vector<8x64xf32>
    %114 = arith.addf %112, %113 : vector<8x64xf32>
    %115 = vector.extract_strided_slice %101 {offsets = [0, 128], sizes = [8, 64], strides = [1, 1]} : vector<8x256xf32> to vector<8x64xf32>
    %116 = arith.addf %115, %9 : vector<8x64xf32>
    %117 = arith.mulf %110, %116 : vector<8x64xf32>
    %118 = arith.addf %114, %117 : vector<8x64xf32>
    %119 = math.tanh %118 : vector<8x64xf32>
    %120 = arith.subf %99, %119 : vector<8x64xf32>
    %121 = arith.mulf %111, %120 : vector<8x64xf32>
    %122 = arith.addf %119, %121 : vector<8x64xf32>
    %123 = vector.extract_strided_slice %6 {offsets = [40, 0], sizes = [8, 192], strides = [1, 1]} : vector<64x192xf32> to vector<8x192xf32>
    %cst_17 = arith.constant dense<0.000000e+00> : vector<8x256xf32>
    %124 = tpu.matmul %122, %10, %cst_17 {dimension_numbers = #tpu.dot_dimension_numbers<[1], [0], [0], [1], [0, 0, 1, 1], [], []>} : vector<8x64xf32>, vector<64x256xf32>, vector<8x256xf32> -> vector<8x256xf32>
    %125 = vector.extract_strided_slice %124 {offsets = [0, 0], sizes = [8, 128], strides = [1, 1]} : vector<8x256xf32> to vector<8x128xf32>
    %126 = vector.extract_strided_slice %123 {offsets = [0, 0], sizes = [8, 128], strides = [1, 1]} : vector<8x192xf32> to vector<8x128xf32>
    %127 = arith.addf %125, %126 : vector<8x128xf32>
    %128 = arith.negf %127 : vector<8x128xf32>
    %129 = math.exp %128 : vector<8x128xf32>
    %cst_18 = arith.constant 1.000000e+00 : f32
    %130 = vector.broadcast %cst_18 : f32 to vector<8x128xf32>
    %131 = arith.addf %130, %129 : vector<8x128xf32>
    %132 = arith.divf %130, %131 : vector<8x128xf32>
    %133 = vector.extract_strided_slice %132 {offsets = [0, 0], sizes = [8, 64], strides = [1, 1]} : vector<8x128xf32> to vector<8x64xf32>
    %134 = vector.extract_strided_slice %132 {offsets = [0, 64], sizes = [8, 64], strides = [1, 1]} : vector<8x128xf32> to vector<8x64xf32>
    %135 = vector.extract_strided_slice %123 {offsets = [0, 128], sizes = [8, 64], strides = [1, 1]} : vector<8x192xf32> to vector<8x64xf32>
    %136 = vector.extract_strided_slice %124 {offsets = [0, 192], sizes = [8, 64], strides = [1, 1]} : vector<8x256xf32> to vector<8x64xf32>
    %137 = arith.addf %135, %136 : vector<8x64xf32>
    %138 = vector.extract_strided_slice %124 {offsets = [0, 128], sizes = [8, 64], strides = [1, 1]} : vector<8x256xf32> to vector<8x64xf32>
    %139 = arith.addf %138, %9 : vector<8x64xf32>
    %140 = arith.mulf %133, %139 : vector<8x64xf32>
    %141 = arith.addf %137, %140 : vector<8x64xf32>
    %142 = math.tanh %141 : vector<8x64xf32>
    %143 = arith.subf %122, %142 : vector<8x64xf32>
    %144 = arith.mulf %134, %143 : vector<8x64xf32>
    %145 = arith.addf %142, %144 : vector<8x64xf32>
    %146 = vector.extract_strided_slice %6 {offsets = [48, 0], sizes = [8, 192], strides = [1, 1]} : vector<64x192xf32> to vector<8x192xf32>
    %cst_19 = arith.constant dense<0.000000e+00> : vector<8x256xf32>
    %147 = tpu.matmul %145, %10, %cst_19 {dimension_numbers = #tpu.dot_dimension_numbers<[1], [0], [0], [1], [0, 0, 1, 1], [], []>} : vector<8x64xf32>, vector<64x256xf32>, vector<8x256xf32> -> vector<8x256xf32>
    %148 = vector.extract_strided_slice %147 {offsets = [0, 0], sizes = [8, 128], strides = [1, 1]} : vector<8x256xf32> to vector<8x128xf32>
    %149 = vector.extract_strided_slice %146 {offsets = [0, 0], sizes = [8, 128], strides = [1, 1]} : vector<8x192xf32> to vector<8x128xf32>
    %150 = arith.addf %148, %149 : vector<8x128xf32>
    %151 = arith.negf %150 : vector<8x128xf32>
    %152 = math.exp %151 : vector<8x128xf32>
    %cst_20 = arith.constant 1.000000e+00 : f32
    %153 = vector.broadcast %cst_20 : f32 to vector<8x128xf32>
    %154 = arith.addf %153, %152 : vector<8x128xf32>
    %155 = arith.divf %153, %154 : vector<8x128xf32>
    %156 = vector.extract_strided_slice %155 {offsets = [0, 0], sizes = [8, 64], strides = [1, 1]} : vector<8x128xf32> to vector<8x64xf32>
    %157 = vector.extract_strided_slice %155 {offsets = [0, 64], sizes = [8, 64], strides = [1, 1]} : vector<8x128xf32> to vector<8x64xf32>
    %158 = vector.extract_strided_slice %146 {offsets = [0, 128], sizes = [8, 64], strides = [1, 1]} : vector<8x192xf32> to vector<8x64xf32>
    %159 = vector.extract_strided_slice %147 {offsets = [0, 192], sizes = [8, 64], strides = [1, 1]} : vector<8x256xf32> to vector<8x64xf32>
    %160 = arith.addf %158, %159 : vector<8x64xf32>
    %161 = vector.extract_strided_slice %147 {offsets = [0, 128], sizes = [8, 64], strides = [1, 1]} : vector<8x256xf32> to vector<8x64xf32>
    %162 = arith.addf %161, %9 : vector<8x64xf32>
    %163 = arith.mulf %156, %162 : vector<8x64xf32>
    %164 = arith.addf %160, %163 : vector<8x64xf32>
    %165 = math.tanh %164 : vector<8x64xf32>
    %166 = arith.subf %145, %165 : vector<8x64xf32>
    %167 = arith.mulf %157, %166 : vector<8x64xf32>
    %168 = arith.addf %165, %167 : vector<8x64xf32>
    %169 = vector.extract_strided_slice %6 {offsets = [56, 0], sizes = [8, 192], strides = [1, 1]} : vector<64x192xf32> to vector<8x192xf32>
    %cst_21 = arith.constant dense<0.000000e+00> : vector<8x256xf32>
    %170 = tpu.matmul %168, %10, %cst_21 {dimension_numbers = #tpu.dot_dimension_numbers<[1], [0], [0], [1], [0, 0, 1, 1], [], []>} : vector<8x64xf32>, vector<64x256xf32>, vector<8x256xf32> -> vector<8x256xf32>
    %171 = vector.extract_strided_slice %170 {offsets = [0, 0], sizes = [8, 128], strides = [1, 1]} : vector<8x256xf32> to vector<8x128xf32>
    %172 = vector.extract_strided_slice %169 {offsets = [0, 0], sizes = [8, 128], strides = [1, 1]} : vector<8x192xf32> to vector<8x128xf32>
    %173 = arith.addf %171, %172 : vector<8x128xf32>
    %174 = arith.negf %173 : vector<8x128xf32>
    %175 = math.exp %174 : vector<8x128xf32>
    %cst_22 = arith.constant 1.000000e+00 : f32
    %176 = vector.broadcast %cst_22 : f32 to vector<8x128xf32>
    %177 = arith.addf %176, %175 : vector<8x128xf32>
    %178 = arith.divf %176, %177 : vector<8x128xf32>
    %179 = vector.extract_strided_slice %178 {offsets = [0, 0], sizes = [8, 64], strides = [1, 1]} : vector<8x128xf32> to vector<8x64xf32>
    %180 = vector.extract_strided_slice %178 {offsets = [0, 64], sizes = [8, 64], strides = [1, 1]} : vector<8x128xf32> to vector<8x64xf32>
    %181 = vector.extract_strided_slice %169 {offsets = [0, 128], sizes = [8, 64], strides = [1, 1]} : vector<8x192xf32> to vector<8x64xf32>
    %182 = vector.extract_strided_slice %170 {offsets = [0, 192], sizes = [8, 64], strides = [1, 1]} : vector<8x256xf32> to vector<8x64xf32>
    %183 = arith.addf %181, %182 : vector<8x64xf32>
    %184 = vector.extract_strided_slice %170 {offsets = [0, 128], sizes = [8, 64], strides = [1, 1]} : vector<8x256xf32> to vector<8x64xf32>
    %185 = arith.addf %184, %9 : vector<8x64xf32>
    %186 = arith.mulf %179, %185 : vector<8x64xf32>
    %187 = arith.addf %183, %186 : vector<8x64xf32>
    %188 = math.tanh %187 : vector<8x64xf32>
    %189 = arith.subf %168, %188 : vector<8x64xf32>
    %190 = arith.mulf %180, %189 : vector<8x64xf32>
    %191 = arith.addf %188, %190 : vector<8x64xf32>
    %192 = vector.extract_strided_slice %6 {offsets = [56, 0], sizes = [8, 192], strides = [1, 1]} : vector<64x192xf32> to vector<8x192xf32>
    %cst_23 = arith.constant dense<0.000000e+00> : vector<8x256xf32>
    %193 = tpu.matmul %191, %10, %cst_23 {dimension_numbers = #tpu.dot_dimension_numbers<[1], [0], [0], [1], [0, 0, 1, 1], [], []>} : vector<8x64xf32>, vector<64x256xf32>, vector<8x256xf32> -> vector<8x256xf32>
    %194 = vector.extract_strided_slice %193 {offsets = [0, 0], sizes = [8, 128], strides = [1, 1]} : vector<8x256xf32> to vector<8x128xf32>
    %195 = vector.extract_strided_slice %192 {offsets = [0, 0], sizes = [8, 128], strides = [1, 1]} : vector<8x192xf32> to vector<8x128xf32>
    %196 = arith.addf %194, %195 : vector<8x128xf32>
    %197 = arith.negf %196 : vector<8x128xf32>
    %198 = math.exp %197 : vector<8x128xf32>
    %cst_24 = arith.constant 1.000000e+00 : f32
    %199 = vector.broadcast %cst_24 : f32 to vector<8x128xf32>
    %200 = arith.addf %199, %198 : vector<8x128xf32>
    %201 = arith.divf %199, %200 : vector<8x128xf32>
    %202 = vector.extract_strided_slice %201 {offsets = [0, 0], sizes = [8, 64], strides = [1, 1]} : vector<8x128xf32> to vector<8x64xf32>
    %203 = vector.extract_strided_slice %201 {offsets = [0, 64], sizes = [8, 64], strides = [1, 1]} : vector<8x128xf32> to vector<8x64xf32>
    %204 = vector.extract_strided_slice %192 {offsets = [0, 128], sizes = [8, 64], strides = [1, 1]} : vector<8x192xf32> to vector<8x64xf32>
    %205 = vector.extract_strided_slice %193 {offsets = [0, 192], sizes = [8, 64], strides = [1, 1]} : vector<8x256xf32> to vector<8x64xf32>
    %206 = arith.addf %204, %205 : vector<8x64xf32>
    %207 = vector.extract_strided_slice %193 {offsets = [0, 128], sizes = [8, 64], strides = [1, 1]} : vector<8x256xf32> to vector<8x64xf32>
    %208 = arith.addf %207, %9 : vector<8x64xf32>
    %209 = arith.mulf %202, %208 : vector<8x64xf32>
    %210 = arith.addf %206, %209 : vector<8x64xf32>
    %211 = math.tanh %210 : vector<8x64xf32>
    %212 = arith.subf %191, %211 : vector<8x64xf32>
    %213 = arith.mulf %203, %212 : vector<8x64xf32>
    %214 = arith.addf %211, %213 : vector<8x64xf32>
    %c0_25 = arith.constant 0 : index
    %c0_26 = arith.constant 0 : index
    %215 = vector.load %arg3[%c0_25, %c0_26] : memref<120x32xf32, #tpu.memory_space<vmem>>, vector<120x32xf32>
    %216 = vector.extract_strided_slice %215 {offsets = [0, 0], sizes = [64, 32], strides = [1, 1]} : vector<120x32xf32> to vector<64x32xf32>
    %cst_27 = arith.constant dense<0.000000e+00> : vector<8x32xf32>
    %217 = tpu.matmul %214, %216, %cst_27 {dimension_numbers = #tpu.dot_dimension_numbers<[1], [0], [0], [1], [0, 0, 1, 1], [], []>} : vector<8x64xf32>, vector<64x32xf32>, vector<8x32xf32> -> vector<8x32xf32>
    %c0_28 = arith.constant 0 : index
    %c0_29 = arith.constant 0 : index
    %218 = vector.load %arg5[%c0_28, %c0_29] : memref<8x24xf32, #tpu.memory_space<vmem>>, vector<8x24xf32>
    %219 = vector.extract_strided_slice %215 {offsets = [64, 0], sizes = [24, 32], strides = [1, 1]} : vector<120x32xf32> to vector<24x32xf32>
    %cst_30 = arith.constant dense<0.000000e+00> : vector<8x32xf32>
    %220 = tpu.matmul %218, %219, %cst_30 {dimension_numbers = #tpu.dot_dimension_numbers<[1], [0], [0], [1], [0, 0, 1, 1], [], []>} : vector<8x24xf32>, vector<24x32xf32>, vector<8x32xf32> -> vector<8x32xf32>
    %221 = arith.addf %217, %220 : vector<8x32xf32>
    %222 = vector.extract_strided_slice %0 {offsets = [2, 0], sizes = [1, 32], strides = [1, 1]} : vector<4x192xf32> to vector<1x32xf32>
    %223 = vector.broadcast %222 : vector<1x32xf32> to vector<8x32xf32>
    %224 = arith.addf %221, %223 : vector<8x32xf32>
    %cst_31 = arith.constant 0.000000e+00 : f32
    %225 = vector.broadcast %cst_31 : f32 to vector<8x32xf32>
    %226 = arith.maximumf %224, %225 : vector<8x32xf32>
    %227 = vector.extract_strided_slice %215 {offsets = [88, 0], sizes = [32, 32], strides = [1, 1]} : vector<120x32xf32> to vector<32x32xf32>
    %cst_32 = arith.constant dense<0.000000e+00> : vector<8x32xf32>
    %228 = tpu.matmul %226, %227, %cst_32 {dimension_numbers = #tpu.dot_dimension_numbers<[1], [0], [0], [1], [0, 0, 1, 1], [], []>} : vector<8x32xf32>, vector<32x32xf32>, vector<8x32xf32> -> vector<8x32xf32>
    %229 = vector.extract_strided_slice %228 {offsets = [0, 0], sizes = [8, 4], strides = [1, 1]} : vector<8x32xf32> to vector<8x4xf32>
    %230 = vector.extract_strided_slice %0 {offsets = [3, 0], sizes = [1, 4], strides = [1, 1]} : vector<4x192xf32> to vector<1x4xf32>
    %231 = vector.broadcast %230 : vector<1x4xf32> to vector<8x4xf32>
    %232 = arith.addf %229, %231 : vector<8x4xf32>
    %c0_33 = arith.constant 0 : index
    %c0_34 = arith.constant 0 : index
    %233 = vector.load %arg6[%c0_33, %c0_34] : memref<8x4xf32, #tpu.memory_space<vmem>>, vector<8x4xf32>
    tpu.vector_store %arg6[%c0_33, %c0_34], %232 {strides = array<i32>} : memref<8x4xf32, #tpu.memory_space<vmem>>, vector<8x4xf32>,
    return
  }
}

</mosaic_0001>

<bundles_post_ra>
// kernel: forward.1
= control target key start
LH: loop header
LB: loop body
LE: loop exit
PB: predicated region body
PF: predicated region fallthrough
CT: control target
= control target key end

     0   :  { %v1595_v3 = vmov 0.0   ;;  %vm55_vm0 = vcmask 130048   ;;  %v37_v8 = vlaneseq  ;;  %s1596_s9 = smov 64   ;;  %vm236_vm2 = vcmask 523264   ;;  %s1986_s1 = inlined_call_operand.vmem [shape: f32[16,192], index: 1, kind: input, shape index: {}]   ;;  %s1987_s0 = inlined_call_operand.vmem [shape: f32[64,16], index: 0, kind: input, shape index: {}]   ;;  %s1988_s4 = inlined_call_operand.vmem [shape: f32[4,192], index: 4, kind: input, shape index: {}]   ;;  %s1989_s2 = inlined_call_operand.vmem [shape: f32[64,256], index: 2, kind: input, shape index: {}]   ;;  %s1990_s3 = inlined_call_operand.vmem [shape: f32[120,32], index: 3, kind: input, shape index: {}]   ;;  %s1991_s5 = inlined_call_operand.vmem [shape: f32[8,24], index: 5, kind: input, shape index: {}]   ;;  %s1992_s6 = inlined_call_operand.vmem [shape: f32[8,4], index: 6, kind: output, shape index: {}]  }
   0x1   :  { %v33_v0 = vld [vmem:[%s1986_s1 + $0x8] sm:$0xff]  ;;  %v35_v1 = vld [vmem:[%s1986_s1 + $0x18] sm:$0xff]  ;;  %v32_v2 = vld [vmem:[%s1986_s1] sm:$0xff]  ;;  %144 = vmatprep.mubr.f32.mxu0 %v1595_v3  ;;  %304 = vmatprep.mubr.f32.mxu1 %v1595_v3  ;;  %vm1598_vm3 = vmmov 0   ;;  %vm1061_vm4 = vcmask 195584   ;;  %vm1214_vm5 = vcmask 261120  }
   0x2   :  { %v1384_v4 = vpack.c.bf16 %v35_v1, %v33_v0  ;;  %v34_v5 = vld [vmem:[%s1986_s1 + $0x10] sm:$0xff]  ;;  %v24_v7 = vld [vmem:[%s1987_s0] sm:$0xff]  ;;  %v1654_v9 = vshrl.u32 %v37_v8, 7  ;;  %v198_v29 = vld [vmem:[%s1989_s2 + $0x8] sm:$0xff]  ;;  %v233_v57 = vand.u32 127, %v37_v8  ;;  %vm1293_vm6 = vcmask 31744  }
   0x3   :  { %v1386_v6 = vpack.c.bf16 %v34_v5, %v32_v2  ;;  %v1660_v11 = vld [vmem:[%s1988_s4] sm:$0xff]  ;;  %v200_v30 = vld [vmem:[%s1989_s2 + $0x18] sm:$0xff]  ;;  %v199_v33 = vld [vmem:[%s1989_s2 + $0x10] sm:$0xff] }
   0x4   :  { %1385 = vmatprep.subr.bf16.mxu0 %v1384_v4  ;;  %v39_v10 = vsub.s32 0, %v1654_v9  ;;  %v43_v20 = vsub.s32 4, %v1654_v9  ;;  %v195_v22 = vsub.s32 1, %v1654_v9  ;;  %v197_v31 = vld [vmem:[%s1989_s2] sm:$0xff]  ;;  %v1685_v32 = vpack.c.bf16 %v200_v30, %v198_v29  ;;  %v202_v34 = vld [vmem:[%s1989_s2 + $0x28] sm:$0xff]  ;;  %v204_v35 = vld [vmem:[%s1989_s2 + $0x38] sm:$0xff] }
   0x5   :  { %1387 = vmatpush1.bf16.msra.mxu0 %v1386_v6  ;;  %v1696_v36 = vpack.c.bf16 %v199_v33, %v197_v31  ;;  %v1698_v37 = vpack.c.bf16 %v204_v35, %v202_v34  ;;  %v201_v38 = vld [vmem:[%s1989_s2 + $0x20] sm:$0xff]  ;;  %v203_v39 = vld [vmem:[%s1989_s2 + $0x30] sm:$0xff]  ;;  %v206_v40 = vld [vmem:[%s1989_s2 + $0x48] sm:$0xff]  ;;  %vm234_vm1 = vcmp.lt.s32.totalorder %v233_v57, 32 }
   0x6   :  { %v40_v12 = vrot.slane %v1660_v11, %v39_v10  ;;  %v44_v21 = vrot.slane %v1660_v11, %v43_v20  ;;  %v1672_v24 = vrot.slane %v1660_v11, %v195_v22  ;;  %1389 = vmatprep.subr.bf16.mxu1 %v1685_v32  ;;  %v208_v41 = vld [vmem:[%s1989_s2 + $0x58] sm:$0xff]  ;;  %1421 = vmatprep.subr.bf16.mxu0 %v1685_v32  ;;  %v205_v44 = vld [vmem:[%s1989_s2 + $0x40] sm:$0xff]  ;;  %v207_v45 = vld [vmem:[%s1989_s2 + $0x50] sm:$0xff] }
   0x7   :  { %1391 = vmatpush1.bf16.msra.mxu1 %v1696_v36  ;;  %v1715_v42 = vpack.c.bf16 %v203_v39, %v201_v38  ;;  %v1719_v43 = vpack.c.bf16 %v208_v41, %v206_v40  ;;  %v210_v46 = vld [vmem:[%s1989_s2 + $0x68] sm:$0xff]  ;;  %v212_v47 = vld [vmem:[%s1989_s2 + $0x78] sm:$0xff]  ;;  %v1735_v48 = vpack.c.bf16 %v207_v45, %v205_v44  ;;  %v209_v51 = vld [vmem:[%s1989_s2 + $0x60] sm:$0xff] }
   0x8   :  { %1299 = vmatmul.mubr.msk.f32.vlgmr.msra.gmra.mrb[0].mxu0 %vm55_vm0, %v24_v7  ;;  %v1663_v13 = vrot.slane %v40_v12, %v39_v10  ;;  %v1669_v23 = vrot.slane %v44_v21, %v39_v10  ;;  %1393 = vmatprep.subr.bf16.mxu1 %v1698_v37  ;;  %v1739_v50 = vpack.c.bf16 %v212_v47, %v210_v46  ;;  %v211_v52 = vld [vmem:[%s1989_s2 + $0x70] sm:$0xff]  ;;  %v25_v54 = vld [vmem:[%s1987_s0 + $0x8] sm:$0xff]  ;;  %v27_v47 = vld [vmem:[%s1987_s0 + $0x18] sm:$0xff] }
   0x9   :  { %150 = vmatprep.mubr.f32.mxu0 %v1595_v3  ;;  %1423 = vmatpush1.bf16.msra.mxu0 %v1696_v36  ;;  %v1753_v53 = vpack.c.bf16 %v211_v52, %v209_v51  ;;  %v29_v51 = vld [vmem:[%s1987_s0 + $0x28] sm:$0xff] }
   0xa   :  { %1425 = vmatprep.subr.bf16.mxu0 %v1698_v37 }
   0xb   :  { %1395 = vmatpush1.bf16.msra.mxu1 %v1715_v42 }
   0xc   :  { %1397 = vmatprep.subr.bf16.mxu1 %v1719_v43  ;;  %1300 = vmatmul.mubr.msk.f32.gmra.mrb[2].mxu0 %vm55_vm0, %v25_v54 }
   0xd   :  { %1427 = vmatpush1.bf16.msra.mxu0 %v1715_v42  ;;  %156 = vmatprep.mubr.f32.mxu0 %v1595_v3 }
   0xe   :  { %1429 = vmatprep.subr.bf16.mxu0 %v1719_v43 }
   0xf   :  { %1399 = vmatpush1.bf16.msra.mxu1 %v1735_v48 }
  0x10   :  { %1401 = vmatprep.subr.bf16.mxu1 %v1739_v50 }
  0x11   :  { %1431 = vmatpush1.bf16.msra.mxu0 %v1735_v48 }
  0x12   :  { %1433 = vmatprep.subr.bf16.mxu0 %v1739_v50 }
  0x13   :  { %1403 = vmatpush1.bf16.msra.mxu1 %v1753_v53 }
  0x14   :  { %1405 = vmatprep.subr.bf16.mxu1 %v1685_v32 }
  0x15   :  { %1435 = vmatpush1.bf16.msra.mxu0 %v1753_v53 }
  0x16   :  { %1453 = vmatprep.subr.bf16.mxu0 %v1685_v32 }
  0xdb   :  { %v146_v14 = vpop.f32.mrb[0].mxu0 }
  0xdc   :  { %v147_v15 = vadd.f32 %v146_v14, %v1663_v13  ;;  %v148_v16 = vpop.f32.mrb[1].mxu0 }
  0xdd   :  { %v149_v26 = vadd.f32 %v148_v16, %v1669_v23 }
  0xde   :  { %v1307_v17 = vmul.f32 -1.442695, %v147_v15 }
  0xdf   :  { %v152_v61 = vpop.f32.mrb[2].mxu0 }
  0xe0   :  { %1541 = vpow2.f32 %v1307_v17  ;;  %v154_v62 = vpop.f32.mrb[3].mxu0  ;;  %v153_v63 = vadd.f32 %v152_v61, %v1663_v13 }
  0xe1   :  { %v155_v10 = vadd.f32 %v154_v62, %v1669_v23 }
  0xea   :  { %v1542_v18 = vpop.eup %1541 }
  0xeb   :  { %v216_v19 = vadd.f32 1.0, %v1542_v18 }
  0xed   :  { %1543 = vrcp.f32 %v216_v19  ;;  %v26_v19 = vld [vmem:[%s1987_s0 + $0x10] sm:$0xff] }
  0xee   :  { %1301 = vmatmul.mubr.msk.f32.gmra.mrb[4].mxu0 %vm55_vm0, %v26_v19 }
  0xef   :  { %162 = vmatprep.mubr.f32.mxu0 %v1595_v3 }
  0xf2   :  { %1302 = vmatmul.mubr.msk.f32.gmra.mrb[6].mxu0 %vm55_vm0, %v27_v47 }
  0xf3   :  { %168 = vmatprep.mubr.f32.mxu0 %v1595_v3 }
  0xf7   :  { %v1544_v25 = vpop.eup %1543 }
  0xf8   :  { %v219_v27 = vmul.f32 %v1544_v25, %v1672_v24 }
  0xfa   :  { %v220_v28 = vadd.f32 %v219_v27, %v149_v26 }
  0xfc   :  { %1545 = vtanh.f32 %v220_v28 }
 0x106   :  { %v1546_v49 = vpop.eup %1545 }
 0x107   :  { %223 = vrot.lane.b32.xlu0 %v1546_v49, %s1596_s9 }
 0x179   :  { %v224_v55 = vpop.permute.xlu0 %223 }
 0x17a   :  { %v226_v56 = vmul.f32 %v1544_v25, %v224_v55  ;;  %v30_v55 = vld [vmem:[%s1987_s0 + $0x30] sm:$0xff] }
 0x17c   :  { %228 = vrot.lane.b32.xlu0 %v226_v56, %s1596_s9  ;;  %v31_v56 = vld [vmem:[%s1987_s0 + $0x38] sm:$0xff] }
 0x1c1   :  { %v158_v26 = vpop.f32.mrb[4].mxu0 }
 0x1c2   :  { %v160_v27 = vpop.f32.mrb[5].mxu0  ;;  %v159_v28 = vadd.f32 %v158_v26, %v1663_v13 }
 0x1c3   :  { %v161_v40 = vadd.f32 %v160_v27, %v1669_v23 }
 0x1ee   :  { %v229_v58 = vpop.permute.xlu0 %228 }
 0x1ef   :  { %v231_v59 = vsub.f32 %v1546_v49, %v229_v58  ;;  %v28_v49 = vld [vmem:[%s1987_s0 + $0x20] sm:$0xff] }
 0x1f0   :  { %1303 = vmatmul.mubr.msk.f32.gmra.mrb[8].mxu0 %vm55_vm0, %v28_v49 }
 0x1f1   :  { %v235_v60 = vsel %vm234_vm1, %v231_v59, 0.0  ;;  %174 = vmatprep.mubr.f32.mxu0 %v1595_v3  ;;  %v164_v59 = vpop.f32.mrb[6].mxu0 }
 0x1f2   :  { %1308 = vmatmul.mubr.msk.f32.vlgmr.msra.gmra.mrb[0].mxu1 %vm236_vm2, %v235_v60 }
 0x1f3   :  { %1407 = vmatpush1.bf16.msra.mxu1 %v1696_v36  ;;  %405 = vmatprep.mubr.f32.mxu1 %v1595_v3 }
 0x1f4   :  { %1409 = vmatprep.subr.bf16.mxu1 %v1698_v37  ;;  %1304 = vmatmul.mubr.msk.f32.gmra.mrb[10].mxu0 %vm55_vm0, %v29_v51 }
 0x1f5   :  { %180 = vmatprep.mubr.f32.mxu0 %v1595_v3 }
 0x1f7   :  { %1411 = vmatpush1.bf16.msra.mxu1 %v1715_v42 }
 0x1f8   :  { %1413 = vmatprep.subr.bf16.mxu1 %v1719_v43  ;;  %1305 = vmatmul.mubr.msk.f32.gmra.mrb[12].mxu0 %vm55_vm0, %v30_v55 }
 0x1f9   :  { %186 = vmatprep.mubr.f32.mxu0 %v1595_v3 }
 0x1fb   :  { %1415 = vmatpush1.bf16.msra.mxu1 %v1735_v48 }
 0x1fc   :  { %1417 = vmatprep.subr.bf16.mxu1 %v1739_v50  ;;  %1306 = vmatmul.mubr.msk.f32.gmra.mrb[14].mxu0 %vm55_vm0, %v31_v56 }
 0x1fd   :  { %506 = vmatprep.mubr.f32.mxu0 %v1595_v3 }
 0x1ff   :  { %1419 = vmatpush1.bf16.msra.mxu1 %v1753_v53 }
 0x200   :  { %1437 = vmatprep.subr.bf16.mxu1 %v1685_v32 }
 0x2c5   :  { %v306_v0 = vpop.f32.mrb[0].mxu1 }
 0x2c6   :  { %v311_v1 = vadd.f32 %v306_v0, %v153_v63  ;;  %v308_v2 = vpop.f32.mrb[1].mxu1 }
 0x2c7   :  { %319 = vrot.lane.b32.xlu1 %v308_v2, %s1596_s9  ;;  %v323_v8 = vadd.f32 %v308_v2, %v1672_v24 }
 0x2c8   :  { %v1309_v4 = vmul.f32 -1.442695, %v311_v1 }
 0x2ca   :  { %1547 = vpow2.f32 %v1309_v4 }
 0x2d4   :  { %v1548_v5 = vpop.eup %1547 }
 0x2d5   :  { %v315_v6 = vadd.f32 1.0, %v1548_v5 }
 0x2d7   :  { %1549 = vrcp.f32 %v315_v6 }
 0x2e1   :  { %v1550_v7 = vpop.eup %1549 }
 0x2e2   :  { %v324_v14 = vmul.f32 %v1550_v7, %v323_v8  ;;  %v165_v8 = vadd.f32 %v164_v59, %v1663_v13 }
 0x339   :  { %v320_v12 = vpop.permute.xlu1 %319 }
 0x33a   :  { %v322_v15 = vadd.f32 %v320_v12, %v155_v10 }
 0x33c   :  { %v325_v16 = vadd.f32 %v324_v14, %v322_v15 }
 0x33e   :  { %1551 = vtanh.f32 %v325_v16 }
 0x348   :  { %v1552_v17 = vpop.eup %1551 }
 0x349   :  { %v327_v18 = vsub.f32 %v235_v60, %v1552_v17  ;;  %v166_v60 = vpop.f32.mrb[7].mxu0 }
 0x34a   :  { %v170_v61 = vpop.f32.mrb[8].mxu0  ;;  %v167_v19 = vadd.f32 %v166_v60, %v1669_v23 }
 0x34b   :  { %329 = vrot.lane.b32.xlu1 %v327_v18, %s1596_s9  ;;  %v1828_v62 = vpop.f32.mrb[9].mxu0 }
 0x34c   :  { %v1830_v63 = vpop.f32.mrb[10].mxu0 }
 0x34d   :  { %v1832_v0 = vpop.f32.mrb[11].mxu0  ;;  %v177_v60 = vadd.f32 %v1830_v63, %v1663_v13 }
 0x34e   :  { %v1834_v1 = vpop.f32.mrb[12].mxu0 }
 0x34f   :  { %v1836_v2 = vpop.f32.mrb[13].mxu0 }
 0x350   :  { %v1838_v4 = vpop.f32.mrb[14].mxu0 }
 0x351   :  { %v1840_v5 = vpop.f32.mrb[15].mxu0 }
 0x3bd   :  { %v330_v20 = vpop.permute.xlu1 %329 }
 0x3be   :  { %v332_v21 = vmul.f32 %v1550_v7, %v330_v20 }
 0x3c0   :  { %334 = vrot.lane.b32.xlu0 %v332_v21, %s1596_s9 }
 0x432   :  { %v335_v22 = vpop.permute.xlu0 %334 }
 0x433   :  { %v337_v25 = vadd.f32 %v1552_v17, %v335_v22 }
 0x435   :  { %1310 = vmatmul.mubr.msk.f32.vlgmr.msra.gmra.mrb[2].mxu1 %vm236_vm2, %v337_v25 }
 0x436   :  { %1439 = vmatpush1.bf16.msra.mxu1 %v1696_v36  ;;  %607 = vmatprep.mubr.f32.mxu1 %v1595_v3 }
 0x437   :  { %1441 = vmatprep.subr.bf16.mxu1 %v1698_v37 }
 0x43a   :  { %1443 = vmatpush1.bf16.msra.mxu1 %v1715_v42 }
 0x43b   :  { %1445 = vmatprep.subr.bf16.mxu1 %v1719_v43 }
 0x43e   :  { %1447 = vmatpush1.bf16.msra.mxu1 %v1735_v48 }
 0x43f   :  { %1449 = vmatprep.subr.bf16.mxu1 %v1739_v50 }
 0x442   :  { %1451 = vmatpush1.bf16.msra.mxu1 %v1753_v53 }
 0x443   :  { %1469 = vmatprep.subr.bf16.mxu1 %v1685_v32 }
 0x508   :  { %v407_v29 = vpop.f32.mrb[2].mxu1 }
 0x509   :  { %v412_v30 = vadd.f32 %v407_v29, %v159_v28  ;;  %v409_v31 = vpop.f32.mrb[3].mxu1 }
 0x50a   :  { %420 = vrot.lane.b32.xlu1 %v409_v31, %s1596_s9  ;;  %v424_v39 = vadd.f32 %v409_v31, %v1672_v24 }
 0x50b   :  { %v1311_v33 = vmul.f32 -1.442695, %v412_v30 }
 0x50d   :  { %1553 = vpow2.f32 %v1311_v33 }
 0x517   :  { %v1554_v34 = vpop.eup %1553 }
 0x518   :  { %v416_v35 = vadd.f32 1.0, %v1554_v34  ;;  %v171_v34 = vadd.f32 %v170_v61, %v1663_v13 }
 0x51a   :  { %1555 = vrcp.f32 %v416_v35 }
 0x524   :  { %v1556_v38 = vpop.eup %1555 }
 0x525   :  { %v425_v44 = vmul.f32 %v1556_v38, %v424_v39 }
 0x57c   :  { %v421_v41 = vpop.permute.xlu1 %420 }
 0x57d   :  { %v423_v45 = vadd.f32 %v421_v41, %v161_v40 }
 0x57f   :  { %v426_v46 = vadd.f32 %v425_v44, %v423_v45 }
 0x581   :  { %1557 = vtanh.f32 %v426_v46  ;;  %v173_v46 = vadd.f32 %v1828_v62, %v1669_v23 }
 0x58b   :  { %v1558_v52 = vpop.eup %1557 }
 0x58c   :  { %v428_v54 = vsub.f32 %v337_v25, %v1558_v52 }
 0x58e   :  { %430 = vrot.lane.b32.xlu0 %v428_v54, %s1596_s9 }
 0x600   :  { %v431_v57 = vpop.permute.xlu0 %430 }
 0x601   :  { %v433_v58 = vmul.f32 %v1556_v38, %v431_v57 }
 0x603   :  { %435 = vrot.lane.b32.xlu1 %v433_v58, %s1596_s9 }
 0x675   :  { %v436_v6 = vpop.permute.xlu1 %435 }
 0x676   :  { %v438_v7 = vadd.f32 %v1558_v52, %v436_v6 }
 0x678   :  { %1312 = vmatmul.mubr.msk.f32.vlgmr.msra.gmra.mrb[16].mxu0 %vm236_vm2, %v438_v7 }
 0x679   :  { %1455 = vmatpush1.bf16.msra.mxu0 %v1696_v36  ;;  %708 = vmatprep.mubr.f32.mxu0 %v1595_v3 }
 0x67a   :  { %1457 = vmatprep.subr.bf16.mxu0 %v1698_v37 }
 0x67d   :  { %1459 = vmatpush1.bf16.msra.mxu0 %v1715_v42 }
 0x67e   :  { %1461 = vmatprep.subr.bf16.mxu0 %v1719_v43 }
 0x681   :  { %1463 = vmatpush1.bf16.msra.mxu0 %v1735_v48 }
 0x682   :  { %1465 = vmatprep.subr.bf16.mxu0 %v1739_v50 }
 0x685   :  { %1467 = vmatpush1.bf16.msra.mxu0 %v1753_v53 }
 0x686   :  { %1485 = vmatprep.subr.bf16.mxu0 %v1685_v32 }
 0x74b   :  { %v508_v10 = vpop.f32.mrb[16].mxu0 }
 0x74c   :  { %v513_v12 = vadd.f32 %v508_v10, %v165_v8  ;;  %v510_v14 = vpop.f32.mrb[17].mxu0 }
 0x74d   :  { %521 = vrot.lane.b32.xlu0 %v510_v14, %s1596_s9  ;;  %v525_v20 = vadd.f32 %v510_v14, %v1672_v24  ;;  %v179_v14 = vadd.f32 %v1832_v0, %v1669_v23  ;;  %v183_v0 = vadd.f32 %v1834_v1, %v1663_v13 }
 0x74e   :  { %v1313_v15 = vmul.f32 -1.442695, %v513_v12 }
 0x750   :  { %1559 = vpow2.f32 %v1313_v15 }
 0x75a   :  { %v1560_v16 = vpop.eup %1559 }
 0x75b   :  { %v517_v17 = vadd.f32 1.0, %v1560_v16 }
 0x75d   :  { %1561 = vrcp.f32 %v517_v17 }
 0x767   :  { %v1562_v18 = vpop.eup %1561 }
 0x768   :  { %v526_v22 = vmul.f32 %v1562_v18, %v525_v20 }
 0x7bf   :  { %v522_v21 = vpop.permute.xlu0 %521 }
 0x7c0   :  { %v524_v25 = vadd.f32 %v522_v21, %v167_v19 }
 0x7c2   :  { %v527_v26 = vadd.f32 %v526_v22, %v524_v25 }
 0x7c4   :  { %1563 = vtanh.f32 %v527_v26 }
 0x7ce   :  { %v1564_v27 = vpop.eup %1563 }
 0x7cf   :  { %v529_v28 = vsub.f32 %v438_v7, %v1564_v27 }
 0x7d1   :  { %531 = vrot.lane.b32.xlu1 %v529_v28, %s1596_s9 }
 0x843   :  { %v532_v29 = vpop.permute.xlu1 %531 }
 0x844   :  { %v534_v30 = vmul.f32 %v1562_v18, %v532_v29 }
 0x846   :  { %536 = vrot.lane.b32.xlu0 %v534_v30, %s1596_s9 }
 0x8b8   :  { %v537_v31 = vpop.permute.xlu0 %536 }
 0x8b9   :  { %v539_v33 = vadd.f32 %v1564_v27, %v537_v31 }
 0x8bb   :  { %1314 = vmatmul.mubr.msk.f32.vlgmr.msra.gmra.mrb[4].mxu1 %vm236_vm2, %v539_v33 }
 0x8bc   :  { %1471 = vmatpush1.bf16.msra.mxu1 %v1696_v36  ;;  %809 = vmatprep.mubr.f32.mxu1 %v1595_v3 }
 0x8bd   :  { %1473 = vmatprep.subr.bf16.mxu1 %v1698_v37 }
 0x8c0   :  { %1475 = vmatpush1.bf16.msra.mxu1 %v1715_v42 }
 0x8c1   :  { %1477 = vmatprep.subr.bf16.mxu1 %v1719_v43 }
 0x8c4   :  { %1479 = vmatpush1.bf16.msra.mxu1 %v1735_v48 }
 0x8c5   :  { %1481 = vmatprep.subr.bf16.mxu1 %v1739_v50 }
 0x8c8   :  { %1483 = vmatpush1.bf16.msra.mxu1 %v1753_v53 }
 0x8c9   :  { %1501 = vmatprep.subr.bf16.mxu1 %v1685_v32 }
 0x98e   :  { %v609_v35 = vpop.f32.mrb[4].mxu1 }
 0x98f   :  { %v614_v38 = vadd.f32 %v609_v35, %v171_v34  ;;  %v611_v39 = vpop.f32.mrb[5].mxu1 }
 0x990   :  { %622 = vrot.lane.b32.xlu1 %v611_v39, %s1596_s9  ;;  %v626_v47 = vadd.f32 %v611_v39, %v1672_v24 }
 0x991   :  { %v1315_v40 = vmul.f32 -1.442695, %v614_v38 }
 0x993   :  { %1565 = vpow2.f32 %v1315_v40 }
 0x99d   :  { %v1566_v41 = vpop.eup %1565 }
 0x99e   :  { %v618_v44 = vadd.f32 1.0, %v1566_v41 }
 0x9a0   :  { %1567 = vrcp.f32 %v618_v44  ;;  %v189_v44 = vadd.f32 %v1838_v4, %v1663_v13 }
 0x9aa   :  { %v1568_v45 = vpop.eup %1567 }
 0x9ab   :  { %v627_v32 = vmul.f32 %v1568_v45, %v626_v47 }
 0xa02   :  { %v623_v49 = vpop.permute.xlu1 %622 }
 0xa03   :  { %v625_v51 = vadd.f32 %v623_v49, %v173_v46 }
 0xa05   :  { %v628_v52 = vadd.f32 %v627_v32, %v625_v51  ;;  %v191_v51 = vadd.f32 %v1840_v5, %v1669_v23 }
 0xa07   :  { %1569 = vtanh.f32 %v628_v52 }
 0xa11   :  { %v1570_v54 = vpop.eup %1569 }
 0xa12   :  { %v630_v55 = vsub.f32 %v539_v33, %v1570_v54 }
 0xa14   :  { %632 = vrot.lane.b32.xlu0 %v630_v55, %s1596_s9 }
 0xa86   :  { %v633_v56 = vpop.permute.xlu0 %632 }
 0xa87   :  { %v635_v57 = vmul.f32 %v1568_v45, %v633_v56 }
 0xa89   :  { %637 = vrot.lane.b32.xlu1 %v635_v57, %s1596_s9 }
 0xafb   :  { %v638_v58 = vpop.permute.xlu1 %637 }
 0xafc   :  { %v640_v59 = vadd.f32 %v1570_v54, %v638_v58 }
 0xafe   :  { %1316 = vmatmul.mubr.msk.f32.vlgmr.msra.gmra.mrb[18].mxu0 %vm236_vm2, %v640_v59 }
 0xaff   :  { %1487 = vmatpush1.bf16.msra.mxu0 %v1696_v36  ;;  %910 = vmatprep.mubr.f32.mxu0 %v1595_v3 }
 0xb00   :  { %1489 = vmatprep.subr.bf16.mxu0 %v1698_v37 }
 0xb03   :  { %1491 = vmatpush1.bf16.msra.mxu0 %v1715_v42 }
 0xb04   :  { %1493 = vmatprep.subr.bf16.mxu0 %v1719_v43 }
 0xb07   :  { %1495 = vmatpush1.bf16.msra.mxu0 %v1735_v48 }
 0xb08   :  { %1497 = vmatprep.subr.bf16.mxu0 %v1739_v50 }
 0xb0b   :  { %1499 = vmatpush1.bf16.msra.mxu0 %v1753_v53 }
 0xbd1   :  { %v710_v61 = vpop.f32.mrb[18].mxu0 }
 0xbd2   :  { %v715_v62 = vadd.f32 %v710_v61, %v177_v60  ;;  %v712_v6 = vpop.f32.mrb[19].mxu0 }
 0xbd3   :  { %723 = vrot.lane.b32.xlu0 %v712_v6, %s1596_s9  ;;  %v727_v15 = vadd.f32 %v712_v6, %v1672_v24 }
 0xbd4   :  { %v1317_v7 = vmul.f32 -1.442695, %v715_v62 }
 0xbd6   :  { %1571 = vpow2.f32 %v1317_v7 }
 0xbe0   :  { %v1572_v8 = vpop.eup %1571 }
 0xbe1   :  { %v719_v10 = vadd.f32 1.0, %v1572_v8 }
 0xbe3   :  { %1573 = vrcp.f32 %v719_v10 }
 0xbed   :  { %v1574_v12 = vpop.eup %1573 }
 0xbee   :  { %v728_v17 = vmul.f32 %v1574_v12, %v727_v15 }
 0xc45   :  { %v724_v16 = vpop.permute.xlu0 %723 }
 0xc46   :  { %v726_v18 = vadd.f32 %v724_v16, %v179_v14 }
 0xc48   :  { %v729_v63 = vadd.f32 %v728_v17, %v726_v18  ;;  %v1597_v18 = vmov 0.0|0.0  }
 0xc49   :  { %1516 = vmatprep.subr.bf16.mxu0 %v1597_v18 }
 0xc4a   :  { %1575 = vtanh.f32 %v729_v63  ;;  %v1053_v63 = vld [vmem:[%s1990_s3 + $0x40] sm:$0xff] }
 0xc54   :  { %v1576_v19 = vpop.eup %1575 }
 0xc55   :  { %v731_v20 = vsub.f32 %v640_v59, %v1576_v19 }
 0xc57   :  { %733 = vrot.lane.b32.xlu1 %v731_v20, %s1596_s9  ;;  %v1045_v20 = vld [vmem:[%s1990_s3] sm:$0xff] }
 0xcc9   :  { %v734_v21 = vpop.permute.xlu1 %733 }
 0xcca   :  { %v736_v22 = vmul.f32 %v1574_v12, %v734_v21  ;;  %v1046_v21 = vld [vmem:[%s1990_s3 + $0x8] sm:$0xff] }
 0xccc   :  { %738 = vrot.lane.b32.xlu0 %v736_v22, %s1596_s9  ;;  %v1055_v22 = vld [vmem:[%s1990_s3 + $0x50] sm:$0xff] }
 0xd3e   :  { %v739_v25 = vpop.permute.xlu0 %738 }
 0xd3f   :  { %v741_v26 = vadd.f32 %v1576_v19, %v739_v25  ;;  %v1054_v19 = vld [vmem:[%s1990_s3 + $0x48] sm:$0xff]  ;;  %v1060_v25 = vld [vmem:[%s1991_s5] sm:$0xff] }
 0xd41   :  { %1318 = vmatmul.mubr.msk.f32.vlgmr.msra.gmra.mrb[6].mxu1 %vm236_vm2, %v741_v26 }
 0xd42   :  { %1503 = vmatpush1.bf16.msra.mxu1 %v1696_v36  ;;  %1011 = vmatprep.mubr.f32.mxu1 %v1595_v3 }
 0xd43   :  { %1505 = vmatprep.subr.bf16.mxu1 %v1698_v37 }
 0xd46   :  { %1507 = vmatpush1.bf16.msra.mxu1 %v1715_v42 }
 0xd47   :  { %1509 = vmatprep.subr.bf16.mxu1 %v1719_v43 }
 0xd4a   :  { %1511 = vmatpush1.bf16.msra.mxu1 %v1735_v48  ;;  %v185_v48 = vadd.f32 %v1836_v2, %v1669_v23 }
 0xd4b   :  { %1513 = vmatprep.subr.bf16.mxu1 %v1739_v50 }
 0xd4e   :  { %1515 = vmatpush1.bf16.msra.mxu1 %v1753_v53 }
 0xd4f   :  { %1531 = vmatprep.subr.bf16.mxu1 %v1597_v18 }
 0xe14   :  { %v811_v27 = vpop.f32.mrb[6].mxu1 }
 0xe15   :  { %v816_v28 = vadd.f32 %v811_v27, %v183_v0  ;;  %v813_v36 = vpop.f32.mrb[7].mxu1  ;;  %v1047_v0 = vld [vmem:[%s1990_s3 + $0x10] sm:$0xff]  ;;  %v1048_v27 = vld [vmem:[%s1990_s3 + $0x18] sm:$0xff] }
 0xe16   :  { %824 = vrot.lane.b32.xlu1 %v813_v36, %s1596_s9  ;;  %v828_v50 = vadd.f32 %v813_v36, %v1672_v24 }
 0xe17   :  { %v1319_v29 = vmul.f32 -1.442695, %v816_v28 }
 0xe19   :  { %1577 = vpow2.f32 %v1319_v29  ;;  %v1523_v29 = vpack.c.bf16 %v1048_v27, %v1047_v0 }
 0xe23   :  { %v1578_v37 = vpop.eup %1577 }
 0xe24   :  { %v820_v42 = vadd.f32 1.0, %v1578_v37  ;;  %v1049_v37 = vld [vmem:[%s1990_s3 + $0x20] sm:$0xff] }
 0xe26   :  { %1579 = vrcp.f32 %v820_v42  ;;  %v1050_v42 = vld [vmem:[%s1990_s3 + $0x28] sm:$0xff] }
 0xe30   :  { %v1580_v43 = vpop.eup %1579 }
 0xe31   :  { %v829_v30 = vmul.f32 %v1580_v43, %v828_v50 }
 0xe88   :  { %v825_v53 = vpop.permute.xlu1 %824 }
 0xe89   :  { %v827_v31 = vadd.f32 %v825_v53, %v185_v48  ;;  %v1051_v48 = vld [vmem:[%s1990_s3 + $0x30] sm:$0xff] }
 0xe8b   :  { %v830_v1 = vadd.f32 %v829_v30, %v827_v31 }
 0xe8d   :  { %1581 = vtanh.f32 %v830_v1 }
 0xe97   :  { %v1582_v33 = vpop.eup %1581 }
 0xe98   :  { %v832_v34 = vsub.f32 %v741_v26, %v1582_v33  ;;  %v1520_v26 = vpack.c.bf16 %v1046_v21, %v1045_v20 }
 0xe9a   :  { %834 = vrot.lane.b32.xlu0 %v832_v34, %s1596_s9 }
 0xf0c   :  { %v835_v35 = vpop.permute.xlu0 %834 }
 0xf0d   :  { %v837_v38 = vmul.f32 %v1580_v43, %v835_v35  ;;  %v1526_v43 = vpack.c.bf16 %v1050_v42, %v1049_v37  ;;  %v1056_v35 = vld [vmem:[%s1990_s3 + $0x58] sm:$0xff] }
 0xf0f   :  { %839 = vrot.lane.b32.xlu1 %v837_v38, %s1596_s9  ;;  %v1057_v38 = vld [vmem:[%s1990_s3 + $0x60] sm:$0xff] }
 0xf81   :  { %v840_v39 = vpop.permute.xlu1 %839 }
 0xf82   :  { %v842_v40 = vadd.f32 %v1582_v33, %v840_v39  ;;  %v1532_v39 = vpack.c.bf16 %v1057_v38, %v1056_v35 }
 0xf84   :  { %1320 = vmatmul.mubr.msk.f32.vlgmr.msra.gmra.mrb[20].mxu0 %vm236_vm2, %v842_v40 }
 0xf85   :  { %1351 = vmatprep.mubr.msk.f32.mxu0 %vm1598_vm3, %v1595_v3 }
0x1057   :  { %v912_v2 = vpop.f32.mrb[20].mxu0 }
0x1058   :  { %v914_v41 = vpop.f32.mrb[21].mxu0  ;;  %v917_v45 = vadd.f32 %v912_v2, %v189_v44  ;;  %v1059_v2 = vld [vmem:[%s1990_s3 + $0x70] sm:$0xff] }
0x1059   :  { %925 = vrot.lane.b32.xlu0 %v914_v41, %s1596_s9  ;;  %v929_v52 = vadd.f32 %v914_v41, %v1672_v24 }
0x105a   :  { %v1321_v46 = vmul.f32 -1.442695, %v917_v45 }
0x105c   :  { %1583 = vpow2.f32 %v1321_v46 }
0x1066   :  { %v1584_v47 = vpop.eup %1583 }
0x1067   :  { %v921_v49 = vadd.f32 1.0, %v1584_v47 }
0x1069   :  { %1585 = vrcp.f32 %v921_v49 }
0x1073   :  { %v1586_v32 = vpop.eup %1585 }
0x1074   :  { %v930_v55 = vmul.f32 %v1586_v32, %v929_v52  ;;  %v1290_v52 = vsub.s32 3, %v1654_v9 }
0x10cb   :  { %v926_v54 = vpop.permute.xlu0 %925 }
0x10cc   :  { %v928_v56 = vadd.f32 %v926_v54, %v191_v51  ;;  %v1291_v54 = vrot.slane %v1660_v11, %v1290_v52 }
0x10ce   :  { %v931_v57 = vadd.f32 %v930_v55, %v928_v56 }
0x10d0   :  { %1587 = vtanh.f32 %v931_v57 }
0x10da   :  { %v1588_v58 = vpop.eup %1587 }
0x10db   :  { %v933_v59 = vsub.f32 %v842_v40, %v1588_v58  ;;  %v1058_v40 = vld [vmem:[%s1990_s3 + $0x68] sm:$0xff] }
0x10dc   :  { %v1535_v41 = vpack.c.bf16 %v1059_v2, %v1058_v40 }
0x10dd   :  { %935 = vrot.lane.b32.xlu1 %v933_v59, %s1596_s9 }
0x114f   :  { %v936_v13 = vpop.permute.xlu1 %935 }
0x1150   :  { %v938_v4 = vmul.f32 %v1586_v32, %v936_v13 }
0x1152   :  { %940 = vrot.lane.b32.xlu0 %v938_v4, %s1596_s9 }
0x11c4   :  { %v941_v60 = vpop.permute.xlu0 %940 }
0x11c5   :  { %v943_v61 = vadd.f32 %v1588_v58, %v941_v60 }
0x11c7   :  { %1322 = vmatmul.mubr.msk.f32.vlgmr.msra.gmra.mrb[8].mxu1 %vm236_vm2, %v943_v61 }
0x11c8   :  { %1381 = vmatprep.mubr.msk.f32.mxu1 %vm1598_vm3, %v1595_v3  ;;  %1533 = vmatpush3.bf16.msra.mxu1 %v1532_v39 }
0x11c9   :  { %1534 = vmatprep.subr.bf16.mxu1 %v1597_v18 }
0x11cc   :  { %1536 = vmatpush3.bf16.msra.mxu1 %v1535_v41 }
0x129a   :  { %v1013_v23 = vpop.f32.mrb[8].mxu1 }
0x129b   :  { %v1015_v5 = vpop.f32.mrb[9].mxu1  ;;  %v1018_v62 = vadd.f32 %v1013_v23, %v189_v44  ;;  %v1210_v44 = vsub.s32 2, %v1654_v9 }
0x129c   :  { %1026 = vrot.lane.b32.xlu1 %v1015_v5, %s1596_s9  ;;  %v1030_v12 = vadd.f32 %v1015_v5, %v1672_v24  ;;  %v1517_v24 = vpack.c.bf16 %v1054_v19, %v1053_v63 }
0x129d   :  { %v1323_v6 = vmul.f32 -1.442695, %v1018_v62  ;;  %v1211_v45 = vrot.slane %v1660_v11, %v1210_v44 }
0x129e   :  { %1518 = vmatpush3.bf16.msra.mxu0 %v1517_v24 }
0x129f   :  { %1589 = vpow2.f32 %v1323_v6  ;;  %1349 = vmatprep.subr.mxu0 %v1595_v3 }
0x12a2   :  { %1350 = vmatpush3.msra.mxu0 %v1055_v22 }
0x12a3   :  { %1352 = vmatmul.mubr.msk.f32.vlgmr.msra.gmra.mrb[22].mxu0 %vm1061_vm4, %v1060_v25  ;;  %1519 = vmatprep.subr.bf16.mxu0 %v1597_v18 }
0x12a4   :  { %1521 = vmatpush3.bf16.msra.mxu0 %v1520_v26  ;;  %1370 = vmatprep.mubr.msk.f32.mxu0 %vm1598_vm3, %v1595_v3  ;;  %v1052_v3 = vld [vmem:[%s1990_s3 + $0x38] sm:$0xff] }
0x12a5   :  { %1522 = vmatprep.subr.bf16.mxu0 %v1597_v18  ;;  %v1529_v50 = vpack.c.bf16 %v1052_v3, %v1051_v48 }
0x12a8   :  { %1524 = vmatpush3.bf16.msra.mxu0 %v1523_v29 }
0x12a9   :  { %v1590_v7 = vpop.eup %1589  ;;  %1525 = vmatprep.subr.bf16.mxu0 %v1597_v18 }
0x12aa   :  { %v1022_v8 = vadd.f32 1.0, %v1590_v7 }
0x12ac   :  { %1591 = vrcp.f32 %v1022_v8  ;;  %1527 = vmatpush3.bf16.msra.mxu0 %v1526_v43 }
0x12ad   :  { %1528 = vmatprep.subr.bf16.mxu0 %v1597_v18 }
0x12b0   :  { %1530 = vmatpush3.bf16.msra.mxu0 %v1529_v50 }
0x12b6   :  { %v1592_v10 = vpop.eup %1591 }
0x12b7   :  { %v1031_v15 = vmul.f32 %v1592_v10, %v1030_v12 }
0x130e   :  { %v1027_v14 = vpop.permute.xlu1 %1026 }
0x130f   :  { %v1029_v16 = vadd.f32 %v1027_v14, %v191_v51 }
0x1311   :  { %v1032_v17 = vadd.f32 %v1031_v15, %v1029_v16 }
0x1313   :  { %1593 = vtanh.f32 %v1032_v17 }
0x131d   :  { %v1594_v28 = vpop.eup %1593 }
0x131e   :  { %v1034_v36 = vsub.f32 %v943_v61, %v1594_v28 }
0x1320   :  { %1036 = vrot.lane.b32.xlu0 %v1034_v36, %s1596_s9 }
0x1376   :  { %v1131_v31 = vpop.f32.mrb[22].mxu0 }
0x1377   :  { %v1353_v1 = vpop.f32.mrb[23].mxu0 }
0x1392   :  { %v1037_v53 = vpop.permute.xlu0 %1036 }
0x1393   :  { %v1039_v30 = vmul.f32 %v1592_v10, %v1037_v53 }
0x1395   :  { %1041 = vrot.lane.b32.xlu1 %v1039_v30, %s1596_s9 }
0x1407   :  { %v1042_v33 = vpop.permute.xlu1 %1041 }
0x1408   :  { %v1044_v34 = vadd.f32 %v1594_v28, %v1042_v33 }
0x140a   :  { %1371 = vmatmul.mubr.msk.f32.vlgmr.msra.gmra.mrb[24].mxu0 %vm236_vm2, %v1044_v34 }
0x14dd   :  { %v1204_v46 = vpop.f32.mrb[24].mxu0 }
0x14de   :  { %v1205_v47 = vadd.f32 %v1204_v46, %v1131_v31  ;;  %v1372_v49 = vpop.f32.mrb[25].mxu0 }
0x14e0   :  { %v1212_v32 = vadd.f32 %v1211_v45, %v1205_v47 }
0x14e2   :  { %v1213_v51 = vmax.f32 %v1212_v32, 0.0 }
0x14e4   :  { %1382 = vmatmul.mubr.msk.f32.vlgmr.msra.gmra.mrb[10].mxu1 %vm1214_vm5, %v1213_v51 }
0x15b7   :  { %v1284_v55 = vpop.f32.mrb[10].mxu1 }
0x15b8   :  { %v1292_v56 = vadd.f32 %v1291_v54, %v1284_v55  ;;  %v1383_v57 = vpop.f32.mrb[11].mxu1 }
0x15ba   :  { %1294 = vst.msk [vmem:[%s1992_s6] sm:$0xff] %vm1293_vm6, %v1292_v56 }

</bundles_post_ra>
